<compile_context>
chip_gen: v6e
topology: v6e:2x2x1
jax: 0.10.0
libtpu: 0.0.40
codegen_flags: <defaults>
</compile_context>

<pallas_src>
import jax
import jax.numpy as jnp
from jax.experimental import pallas as pl
from jax.experimental.pallas import tpu as pltpu


def _cdiv(a, b):
    return -(-a // b)


def _round_up(v, m):
    return _cdiv(v, m) * m


def _angle_encoding_kernel(x_ref, o_ref):
    # x_ref: (tile_n, D) VMEM tile; o_ref: (tile_n, 2*D) VMEM tile.
    x = x_ref[...]
    d = x.shape[-1]
    o_ref[:, :d] = jnp.sin(x)
    o_ref[:, d:] = jnp.cos(x)


def _choose_tile_n(n, d, itemsize, vmem_budget_bytes):
    """Largest row tile that fits the VMEM budget, aligned to the sublane pack."""
    # Sub-32-bit dtypes pack along sublanes; keep tile_n a multiple of the pack.
    pack = max(8, 32 // max(1, itemsize))
    if n <= pack:
        return n
    # Double-buffered input (tile_n*D) + double-buffered output (tile_n*2D):
    #   per-step VMEM ~= 6 * tile_n * D * itemsize bytes.
    cap = vmem_budget_bytes // (6 * d * itemsize)
    cap = max(pack, (cap // pack) * pack)
    cap = min(cap, 4096)
    # Keep roughly >=8 grid steps when possible: lets v7x shard rows across its
    # two TensorCores and gives the pipeline work to overlap with DMA.
    steps_cap = max(pack, _round_up(_cdiv(n, 8), pack))
    cap = min(cap, steps_cap)
    return min(cap, _round_up(n, pack))


def angle_encoding(x, dim=-1, *, tile_n=None, vmem_budget_bytes=12 * 1024 * 1024):
    """sin/cos angle encoding, concatenated along `dim` (matches AngleEncoding)."""
    ndim = x.ndim
    axis = dim if dim >= 0 else dim + ndim
    if axis != ndim - 1:
        # General dim: move the encoding axis to the back, encode, move it home.
        xt = jnp.moveaxis(x, axis, -1)
        out = angle_encoding(xt, dim=-1, tile_n=tile_n,
                             vmem_budget_bytes=vmem_budget_bytes)
        return jnp.moveaxis(out, -1, axis)

    orig_shape = x.shape
    d = orig_shape[-1]
    n = 1
    for s in orig_shape[:-1]:
        n *= s
    x2 = x.reshape(n, d)
    itemsize = jnp.dtype(x.dtype).itemsize

    if tile_n is None:
        tile_n = _choose_tile_n(n, d, itemsize, vmem_budget_bytes)
    tile_n = int(tile_n)

    grid = (_cdiv(n, tile_n),)

    out2 = pl.pallas_call(
        _angle_encoding_kernel,
        out_shape=jax.ShapeDtypeStruct((n, 2 * d), x.dtype),
        grid_spec=pltpu.PrefetchScalarGridSpec(
            num_scalar_prefetch=0,
            grid=grid,
            in_specs=[pl.BlockSpec((tile_n, d), lambda i: (i, 0))],
            out_specs=pl.BlockSpec((tile_n, 2 * d), lambda i: (i, 0)),
        ),
        compiler_params=pltpu.CompilerParams(
            dimension_semantics=("parallel",),
            vmem_limit_bytes=32 * 1024 * 1024,
        ),
    )(x2)

    return out2.reshape(*orig_shape[:-1], 2 * d)


if __name__ == "__main__":
    key = jax.random.PRNGKey(0)

    # Small shape consistent with the module's forward: batch=2, seq=8, hidden=128.
    x = jax.random.normal(key, (2, 8, 128), dtype=jnp.float32)
    out = jax.block_until_ready(angle_encoding(x, dim=-1))
    ref = jnp.concatenate([jnp.sin(x), jnp.cos(x)], axis=-1)
    assert out.shape == ref.shape, (out.shape, ref.shape)
    assert jnp.allclose(out, ref, atol=1e-5, rtol=1e-5), "mismatch vs reference"

    # Robustness: row count not a multiple of the tile and D not a multiple of
    # 128 (exercises the cdiv grid / partial-block path).
    x2 = jax.random.normal(jax.random.PRNGKey(1), (5, 96), dtype=jnp.float32)
    out2 = jax.block_until_ready(angle_encoding(x2, dim=-1))
    ref2 = jnp.concatenate([jnp.sin(x2), jnp.cos(x2)], axis=-1)
    assert out2.shape == ref2.shape, (out2.shape, ref2.shape)
    assert jnp.allclose(out2, ref2, atol=1e-5, rtol=1e-5), "mismatch (ragged)"

    # Non-default dim (exercises the moveaxis wrapper path).
    x3 = jax.random.normal(jax.random.PRNGKey(2), (2, 16, 8), dtype=jnp.float32)
    out3 = jax.block_until_ready(angle_encoding(x3, dim=1))
    ref3 = jnp.concatenate([jnp.sin(x3), jnp.cos(x3)], axis=1)
    assert out3.shape == ref3.shape, (out3.shape, ref3.shape)
    assert jnp.allclose(out3, ref3, atol=1e-5, rtol=1e-5), "mismatch (dim=1)"

    print("KERNEL_OK")
</pallas_src>

<mosaic_0001>
module attributes {stable_mosaic.version = 11 : i64} {
  func.func @_angle_encoding_kernel(%arg0: i32, %arg1: memref<8x128xf32, #tpu.memory_space<vmem>>, %arg2: memref<8x256xf32, #tpu.memory_space<vmem>>) attributes {dimension_semantics = [#tpu.dimension_semantics<parallel>], iteration_bounds = array<i64: 2>, scalar_prefetch = 0 : i64, scratch_operands = 0 : i64, tpu.core_type = #tpu.core_type<tc>, window_params = [{transform_indices = @transform_0, window_bounds = array<i64: 8, 128>}, {transform_indices = @transform_1, window_bounds = array<i64: 8, 256>}]} {
    %c0 = arith.constant 0 : index
    %c0_0 = arith.constant 0 : index
    %0 = vector.load %arg1[%c0, %c0_0] : memref<8x128xf32, #tpu.memory_space<vmem>>, vector<8x128xf32>
    %1 = math.sin %0 : vector<8x128xf32>
    %c0_1 = arith.constant 0 : index
    %c0_2 = arith.constant 0 : index
    %2 = vector.load %arg2[%c0_1, %c0_2] : memref<8x256xf32, #tpu.memory_space<vmem>>, vector<8x128xf32>
    tpu.vector_store %arg2[%c0_1, %c0_2], %1 {strides = array<i32>} : memref<8x256xf32, #tpu.memory_space<vmem>>, vector<8x128xf32>,
    %3 = math.cos %0 : vector<8x128xf32>
    %c0_3 = arith.constant 0 : index
    %c128 = arith.constant 128 : index
    %4 = vector.load %arg2[%c0_3, %c128] : memref<8x256xf32, #tpu.memory_space<vmem>>, vector<8x128xf32>
    tpu.vector_store %arg2[%c0_3, %c128], %3 {strides = array<i32>} : memref<8x256xf32, #tpu.memory_space<vmem>>, vector<8x128xf32>,
    return
  }
  func.func @transform_0(%arg0: i32) -> (i32, i32) {
    %c0_i32 = arith.constant 0 : i32
    %c0_i32_0 = arith.constant 0 : i32
    return %arg0, %c0_i32 : i32, i32
  }
  func.func @transform_1(%arg0: i32) -> (i32, i32) {
    %c0_i32 = arith.constant 0 : i32
    %c0_i32_0 = arith.constant 0 : i32
    return %arg0, %c0_i32 : i32, i32
  }
}

</mosaic_0001>

<bundles_post_ra>
// kernel: tpu_custom_call.1
= control target key start
LH: loop header
LB: loop body
LE: loop exit
PB: predicated region body
PF: predicated region fallthrough
CT: control target
= control target key end

     0   :  { %6 = vsyncpa [#allocation3], 0  ;;  %s796_s0 = inlined_call_operand.hbm [shape: f32[16,128], index: 0, kind: input, shape index: {}]   ;;  %s797_s1 = inlined_call_operand.hbm [shape: f32[16,256], index: 1, kind: output, shape index: {}]  }
   0x1   :  { %8 = vsyncpa [#allocation3 + $0x1], 0 }
   0x2   :  { %9 = vsyncpa [#allocation4], 0 }
   0x3   :  { %11 = vsyncpa [#allocation4 + $0x1], 0  ;;  %s621_s6 = smov 0   ;;  %s623_s7 = smov 0  }
   0x4   :  { %s625_s8 = smov 0   ;;  %s627_s9 = smov 0  }
   0x5 LB: > { %s642_s10 = sadd.s32 4294967295, %s601_s9   ;;  %s427_s11 = sadd.s32 4294967294, %s601_s9   ;;  %s601_s9 = sphi %s627_s9, %s814_s9   ;;  %s597_s8 = sphi %s625_s8, %s813_s8   ;;  %s593_s7 = sphi %s623_s7, %s812_s7   ;;  %s589_s6 = sphi %s621_s6, %s811_s6  }
   0x6   : > { %s646_s12 = sadd.s32 1, %s601_s9   ;;  %s24_s13 = sadd.s32 1, %s597_s8 }
   0x7   : > { %s21_s14 = ssub.s32 %s601_s9, %s646_s12  ;;  %p31_p0 = scmp.ne.s32.totalorder %s597_s8, %s593_s7 }
   0x8   : > { %p22_p1 = scmp.eq.s32.totalorder %s21_s14, 0  ;;  %p32_p2 = scmp.eq.s32.totalorder %s601_s9, 0 }
   0x9   : > { %p37_p3 = scmp.ne.s32.totalorder %s593_s7, %s589_s6  ;;  %p38_p4 = scmp.eq.s32.totalorder %s642_s10, 0 }
   0xa   : > { %s658_s15 = scalar_select %p22_p1, %s597_s8, %s24_s13  }
   0xb   : > { %p660_p5 = por %p32_p2, %p31_p0  ;;  %p664_p6 = por %p38_p4, %p37_p3 }
   0xc   : > { %p61_p7 = scmp.eq.s32.totalorder %s642_s10, 1  ;;  %p67_p8 = scmp.eq.s32.totalorder %s427_s11, 1 }
   0xd   : > { %s801_s17 = scalar_select %p664_p6, 1, 0 }
   0xe   : > { %p465_p10 = scmp.lt.s32.totalorder %s601_s9, 2  ;;  %p671_p11 = por %p61_p7, %p31_p0 }
   0xf   : > { %p675_p12 = por %p67_p8, %p37_p3  ;;  %s87_s20 = sand.u32 1, %s597_s8  }
  0x10   : > { %s802_s18 = scalar_select %p671_p11, 1, 0 }
  0x11   : > { %s803_s19 = scalar_select %p675_p12, 1, 0 }
  0x12   : > { %s431_s21 = sshll.u32 %s601_s9, 7  ;;  %s430_s22 = sshll.u32 %s87_s20, 3 }
  0x13   : > { %s684_s25 = scalar_lea.hbm %s796_s0, %s431_s21  ;;  %s91_s26 = scalar_lea.vmem [#allocation2], %s430_s22 }
  0x14   : > { %s98_s27 = sshll.u32 %s91_s26, 4  ;;  %p688_p13 = pnand %p465_p10, %p660_p5  ;;  %s692_s27 = int_to_ptr.vmem [resolvable:$true] %s98_s27 }
  0x15   : > { %s88_s29 = scalar_lea.sflag [#allocation3], %s87_s20  ;;  %s509_s30 = scalar_lea.hbm %s684_s25, 128 }
  0x16   : > { %p510_p2 = scmp.ne.s32.totalorder %s684_s25, %s509_s30  ;;  %p511_p3 = pneg %p688_p13 }
  0x17   : > { %s514_s4 = scalar_lea.hbm %s796_s0, 256  ;;  %p515_p5 = scmp.lt.s32.totalorder %s684_s25, %s796_s0 }
  0x18   : > { %p512_p4 = pnand %p511_p3, %p510_p2  ;;  %p516_p8 = scmp.lt.s32.totalorder %s514_s4, %s509_s30 }
  0x1a   : > { %p513_p7 = pneg %p512_p4  ;;  %p517_p10 = por %p516_p8, %p515_p5 }
  0x1c   : > { %p518_p9 = pnand %p517_p10, %p513_p7 }
  0x1e   : > { %521 = shalt.err (!%p518_p9)
}
  0x1f   : > { %s522_s13 = scalar_lea.vmem %s692_s27, 128  ;;  %s603_s14 = smov [#allocation2]  }
  0x20   : > { %p523_p0 = scmp.ne.s32.totalorder %s692_s27, %s522_s13  ;;  %s527_s16 = sshll.u32 %s603_s14, 4  ;;  %s528_s16 = int_to_ptr.vmem [resolvable:$false] %s527_s16 }
  0x21   : > { %s529_s20 = scalar_lea.vmem %s528_s16, 256  ;;  %p530_p4 = scmp.lt.s32.totalorder %s692_s27, %s528_s16 }
  0x22   : > { %p525_p1 = pnand %p523_p0, %p511_p3  ;;  %p531_p12 = scmp.lt.s32.totalorder %s529_s20, %s522_s13 }
  0x24   : > { %p526_p2 = pneg %p525_p1  ;;  %p532_p11 = por %p531_p12, %p530_p4 }
  0x26   : > { %p533_p6 = pnand %p532_p11, %p526_p2 }
  0x28   : > { %536 = shalt.err (!%p533_p6)
}
  0x29   : > { %460 = dma.hbm_to_vmem [thread:$0]  (!%p688_p13), %s684_s25, 128, %s692_s27, %s88_s29  }
  0x2a   : > { %p805_p9 = scmp.lt.s32.totalorder %s601_s9, 3  ;;  %p806_p7 = scmp.ge.s32.totalorder %s601_s9, 1 }
  0x2c   : > { %p104_p0 = pnand %p806_p7, %p805_p9 }
  0x2d   : > { %s719_s21 = sand.u32 (!%p104_p0), 1, %s593_s7   ;;  %p807_p6 = scmp.ne.s32.totalorder (!%p104_p0), %s801_s17, 0 }
  0x2e   : > { %107 = sbr.rel (%p104_p0) target bundleno = 149 (0x95), region = 24  ;;  %s433_s22 = sshll.u32 (!%p104_p0), %s719_s21, 3 }
  0x2f   : > { %s110_s23 = scalar_lea.sflag (!%p104_p0), [#allocation3], %s719_s21  ;;  %s113_s24 = scalar_lea.vmem (!%p104_p0), [#allocation2], %s433_s22 }
  0x33   : > { %580 = dma.done.wait (%p807_p6), %s110_s23, 128  }
  0x34   : > { %582 = vsyncadd (%p807_p6), %s110_s23, 4294967168  ;;  %v727_v0 = vld [vmem:[%s113_s24] sm:$0xff]  ;;  %v604_v12 = vmov 683565275   ;;  %v605_v14 = vmov 2475754826  }
  0x35   : > { %v136_v1 = vand.u32 2139095040, %v727_v0  ;;  %v133_v3 = vand.u32 2147483647, %v727_v0  ;;  %v606_v16 = vmov 2131351028   ;;  %vm135_vm7 = vcmp.lt.s32.totalorder %v727_v0, 0 }
  0x36   : > { %v607_v18 = vmov 2102212464   ;;  %v608_v20 = vmov 920167782   ;;  %v609_v27 = vmov 1326507024   ;;  %vm225_vm15 = vweird.f32 %v727_v0 }
  0x37   : > { %v137_v2 = vshrl.u32 %v136_v1, 23  ;;  %v140_v6 = vand.u32 8388607, %v133_v3  ;;  %vm134_vm8 = vcmp.le.f32.partialorder %v133_v3, 0.7853982  ;;  %s434_s17 = sshll.u32 %s719_s21, 4 }
  0x38   : > { %s131_s25 = scalar_lea.vmem [#allocation5], %s434_s17  ;;  %s448_s27 = sshll.u32 %s642_s10, 8 }
  0x39   : > { %v435_v4 = vadd.s32 4294967169, %v137_v2  ;;  %v141_v9 = vor.u32 8388608, %v140_v6  ;;  %s357_s26 = sshll.u32 %s131_s25, 4  ;;  %s755_s30 = scalar_lea.hbm %s797_s1, %s448_s27  ;;  %s750_s26 = int_to_ptr.vmem [resolvable:$true] %s357_s26 }
  0x3a   : > { %s343_s10 = scalar_lea.sflag [#allocation4], %s719_s21  ;;  %s537_s2 = scalar_lea.vmem %s750_s26, 256 }
  0x3b   : > { %v143_v5 = vadd.s32 1, %v435_v4  ;;  %v181_v29 = vshll.u32 %v141_v9, 8  ;;  %p538_p11 = scmp.ne.s32.totalorder %s750_s26, %s537_s2  ;;  %p808_p12 = scmp.ne.s32.totalorder %s802_s18, 0 }
  0x3c   : > { %s610_s3 = smov [#allocation5]  }
  0x3d   : > { %vm144_vm0 = vcmp.gt.s32.totalorder %v143_v5, 0  ;;  %p539_p13 = pnand %p538_p11, %p808_p12  ;;  %s541_s4 = sshll.u32 %s610_s3, 4  ;;  %s542_s4 = int_to_ptr.vmem [resolvable:$false] %s541_s4 }
  0x3e   : > { %v145_v7 = vsel %vm144_vm0, %v143_v5, 0  ;;  %s543_s5 = scalar_lea.vmem %s542_s4, 512  ;;  %p544_p3 = scmp.lt.s32.totalorder %s750_s26, %s542_s4 }
  0x3f   : > { %v147_v8 = vand.u32 31, %v145_v7  ;;  %v146_v10 = vshrl.u32 %v145_v7, 5  ;;  %p540_p1 = pneg %p539_p13  ;;  %p545_p5 = scmp.lt.s32.totalorder %s543_s5, %s537_s2 }
  0x41   : > { %v148_v11 = vsub.s32 32, %v147_v8  ;;  %v150_v13 = vshll.u32 %v604_v12, %v147_v8  ;;  %v153_v15 = vshll.u32 %v605_v14, %v147_v8  ;;  %v156_v17 = vshll.u32 %v606_v16, %v147_v8  ;;  %p546_p8 = por %p545_p5, %p544_p3 }
  0x42   : > { %v159_v19 = vshll.u32 %v607_v18, %v147_v8  ;;  %v162_v21 = vshll.u32 %v608_v20, %v147_v8  ;;  %vm165_vm1 = vcmp.lt.s32.totalorder %v146_v10, 1  ;;  %vm168_vm2 = vcmp.lt.s32.totalorder %v146_v10, 4 }
  0x43   : > { %v149_v22 = vshrl.u32 %v604_v12, %v148_v11  ;;  %v151_v23 = vshrl.u32 %v605_v14, %v148_v11  ;;  %v154_v24 = vshrl.u32 %v606_v16, %v148_v11  ;;  %v157_v25 = vshrl.u32 %v607_v18, %v148_v11  ;;  %p547_p10 = pnand %p546_p8, %p540_p1 }
  0x44   : > { %v160_v26 = vshrl.u32 %v608_v20, %v148_v11  ;;  %v163_v28 = vshrl.u32 %v609_v27, %v148_v11  ;;  %vm166_vm3 = vcmp.lt.s32.totalorder %v146_v10, 2  ;;  %vm167_vm4 = vcmp.lt.s32.totalorder %v146_v10, 3 }
  0x45   : > { %v152_v30 = vor.u32 %v151_v23, %v150_v13  ;;  %v155_v31 = vor.u32 %v154_v24, %v153_v15  ;;  %v158_v32 = vor.u32 %v157_v25, %v156_v17 }
  0x46   : > { %v161_v33 = vor.u32 %v160_v26, %v159_v19  ;;  %v164_v34 = vor.u32 %v163_v28, %v162_v21 }
  0x47   : > { %v169_v35 = vsel %vm165_vm1, %v149_v22, %v152_v30  ;;  %v170_v36 = vsel %vm168_vm2, %v158_v32, 2102212464  ;;  %v173_v37 = vsel %vm165_vm1, %v152_v30, %v155_v31  ;;  %v177_v38 = vsel %vm165_vm1, %v155_v31, %v158_v32 }
  0x48   : > { %v171_v39 = vsel %vm167_vm4, %v155_v31, %v170_v36  ;;  %v174_v40 = vsel %vm168_vm2, %v161_v33, 920167782  ;;  %v178_v41 = vsel %vm168_vm2, %v164_v34, 1326507024 }
  0x49   : > { %v175_v42 = vsel %vm167_vm4, %v158_v32, %v174_v40  ;;  %v179_v43 = vsel %vm167_vm4, %v161_v33, %v178_v41  ;;  %v172_v44 = vsel %vm166_vm3, %v169_v35, %v171_v39 }
  0x4a   : > { %v176_v45 = vsel %vm166_vm3, %v173_v37, %v175_v42  ;;  %v180_v46 = vsel %vm166_vm3, %v177_v38, %v179_v43  ;;  %v188_v51 = vmul.u32 %v181_v29, %v172_v44 }
  0x4b   : > { %v733_v47 = vmul.u32.u64.low %v181_v29, %v180_v46  ;;  %v734_v48 = vmul.u32.u64.high %v181_v29, %v180_v46, %v733_v47  ;;  %v736_v49 = vmul.u32.u64.low %v181_v29, %v176_v45  ;;  %v737_v50 = vmul.u32.u64.high %v181_v29, %v176_v45, %v736_v49 }
  0x4d   : > { %vm190_vm5 = vc.u32 %v734_v48, %v736_v49  ;;  %v191_v52 = vadd.s32 1, %v737_v50  ;;  %v189_v63 = vadd.s32 %v736_v49, %v734_v48 }
  0x4f   : > { %v192_v53 = vsel %vm190_vm5, %v191_v52, %v737_v50 }
  0x50   : > { %v193_v54 = vadd.s32 %v192_v53, %v188_v51 }
  0x52   : > { %v194_v55 = vadd.s32 536870912, %v193_v54 }
  0x54   : > { %v195_v56 = vshrl.u32 %v194_v55, 30 }
  0x56   : > { %v196_v57 = vshll.u32 %v195_v56, 30  ;;  %v219_v14 = vsub.s32 4, %v195_v56 }
  0x58   : > { %v197_v58 = vsub.s32 %v193_v54, %v196_v57  ;;  %v220_v17 = vsel %vm135_vm7, %v219_v14, %v195_v56 }
  0x59   : > { %v222_v19 = vsel %vm134_vm8, 0, %v220_v17 }
  0x5a   : > { %v199_v59 = vsub.s32 0, %v197_v58  ;;  %v226_v20 = vadd.s32 3, %v222_v19  ;;  %v331_v22 = vand.u32 3, %v222_v19 }
  0x5c   : > { %v436_v60 = vmin.u32 %v199_v59, %v197_v58  ;;  %v227_v21 = vand.u32 3, %v226_v20  ;;  %vm336_vm10 = vcmp.eq.s32.totalorder %v331_v22, 2  ;;  %vm333_vm12 = vcmp.eq.s32.totalorder %v331_v22, 0 }
  0x5d   : > { %vm332_vm14 = vcmp.lt.s32.totalorder %v331_v22, 2 }
  0x5e   : > { %v201_v61 = vclz %v436_v60  ;;  %vm232_vm9 = vcmp.eq.s32.totalorder %v227_v21, 2  ;;  %vm229_vm11 = vcmp.eq.s32.totalorder %v227_v21, 0  ;;  %vm228_vm13 = vcmp.lt.s32.totalorder %v227_v21, 2 }
  0x60   : > { %v437_v62 = vadd.s32 4294967294, %v201_v61 }
  0x62   : > { %vm438_vm6 = vcmp.lt.s32.totalorder %v437_v62, 0 }
  0x63   : > { %v204_v1 = vsel %vm438_vm6, 0, %v437_v62 }
  0x64   : > { %v205_v2 = vsub.s32 32, %v204_v1  ;;  %v206_v4 = vshll.u32 %v197_v58, %v204_v1  ;;  %v209_v5 = vsub.s32 4294967266, %v204_v1 }
  0x66   : > { %v207_v6 = vshrl.u32 %v189_v63, %v205_v2  ;;  %v210_v7 = vadd.s32 127, %v209_v5 }
  0x68   : > { %v208_v8 = vor.u32 %v207_v6, %v206_v4  ;;  %v211_v9 = vshll.u32 %v210_v7, 23 }
  0x6a   : > { %v212_v10 = vor.u32 4788187, %v211_v9  ;;  %v215_v11 = vcvt.s32.f32 %v208_v8 }
  0x6c   : > { %v213_v12 = vand.u32 2147483647, %v212_v10 }
  0x6e   : > { %v216_v13 = vmul.f32 %v215_v11, %v213_v12 }
  0x70   : > { %v217_v15 = vxor.u32 2147483648, %v216_v13 }
  0x72   : > { %v218_v16 = vsel %vm135_vm7, %v217_v15, %v216_v13 }
  0x73   : > { %v221_v18 = vsel %vm134_vm8, %v727_v0, %v218_v16 }
  0x74   : > { %505 = vcosq.f32 %v221_v18 }
  0x75   : > { %507 = vsinq.f32 %v221_v18 }
  0x81   : > { %v506_v23 = vpop.eup %505 }
  0x82   : > { %v508_v24 = vpop.eup %507  ;;  %v233_v25 = vxor.u32 2147483648, %v506_v23 }
  0x83   : > { %v230_v3 = vxor.u32 2147483648, %v508_v24 }
  0x84   : > { %v234_v26 = vsel %vm232_vm9, %v233_v25, %v508_v24  ;;  %v338_v27 = vsel %vm336_vm10, %v233_v25, %v508_v24 }
  0x85   : > { %v231_v28 = vsel %vm229_vm11, %v506_v23, %v230_v3  ;;  %v335_v29 = vsel %vm333_vm12, %v506_v23, %v230_v3 }
  0x86   : > { %v235_v30 = vsel %vm228_vm13, %v231_v28, %v234_v26  ;;  %v339_v31 = vsel %vm332_vm14, %v335_v29, %v338_v27 }
  0x87   : > { %v236_v32 = vsel %vm225_vm15, nan, %v235_v30  ;;  %v340_v33 = vsel %vm225_vm15, nan, %v339_v31 }
  0x88   : > { %237 = vst [vmem:[%s131_s25] sm:$0xff] %v236_v32  ;;  %341 = vst [vmem:[%s131_s25 + $0x8] sm:$0xff] %v340_v33 }
  0x89   : > { %550 = shalt.err (!%p547_p10)
}
  0x8a   : > { %s551_s11 = scalar_lea.hbm %s755_s30, 256  ;;  %s555_s16 = scalar_lea.hbm %s797_s1, 512 }
  0x8b   : > { %p552_p2 = scmp.ne.s32.totalorder %s755_s30, %s551_s11  ;;  %p556_p7 = scmp.lt.s32.totalorder %s755_s30, %s797_s1 }
  0x8c   : > { %p557_p0 = scmp.lt.s32.totalorder %s555_s16, %s551_s11 }
  0x8d   : > { %p553_p4 = pnand %p552_p2, %p808_p12 }
  0x8e   : > { %p558_p6 = por %p557_p0, %p556_p7 }
  0x8f   : > { %p554_p9 = pneg %p553_p4 }
  0x91   : > { %p559_p11 = pnand %p558_p6, %p554_p9 }
  0x93   : > { %562 = shalt.err (!%p559_p11)
}
  0x94   : > { %455 = dma.vmem_to_hbm [thread:$0]  (%p808_p12), %s750_s26, 256, %s755_s30, %s343_s10  }
  0x95 PF: > { %s369_s22 = sand.u32 1, %s589_s6   ;;  %p809_p13 = scmp.ne.s32.totalorder %s803_s19, 0 }
  0x96   : > { %p810_p1 = scmp.ge.s32.totalorder %s601_s9, 2  ;;  %s370_s23 = scalar_lea.sflag [#allocation4], %s369_s22 }
  0x98   : > { %p462_p3 = pnand %p810_p1, %p809_p13 }
  0x9a   : > { %p463_p5 = pneg %p462_p3 }
  0x9c   : > { %584 = dma.done.wait (%p463_p5), %s370_s23, 256  }
  0x9d   : > { %586 = vsyncadd (%p463_p5), %s370_s23, 4294967040  ;;  %p14_p8 = scmp.ge.s32.totalorder %s646_s12, 4   ;;  %s811_s6 = smov %s593_s7 }
  0x9e   : > { %s812_s7 = smov %s597_s8  ;;  %s813_s8 = smov %s658_s15 }
  0x9f   : > { %s814_s9 = smov %s646_s12  ;;  %16 = sbr.rel (!%p14_p8) target bundleno = 5 (0x5), region = 69 }
  0xa4   :  { %375 = vsyncpa [#allocation3], 1 }
  0xa5   :  { %377 = vsyncpa [#allocation3 + $0x1], 1 }
  0xa6   :  { %378 = vsyncpa [#allocation4], 1 }
  0xa7   :  { %380 = vsyncpa [#allocation4 + $0x1], 1 }

</bundles_post_ra>
